<compile_context>
chip_gen: v7x
topology: tpu7x:2x2x1
jax: 0.10.0
libtpu: 0.0.40
codegen_flags: <defaults>
</compile_context>

<pallas_src>
import functools

import jax
import jax.numpy as jnp
from jax import lax
from jax.experimental import pallas as pl
from jax.experimental.pallas import tpu as pltpu

CLASSIFIC_LOSS_WEIGHT = 5.0
GAMMA = 2.0            # module fixes gamma=2; implemented as a plain square below

DEFAULT_TILE_N = 512   # >=512-row tiles reach ~85% of HBM roofline and still fit the
                       # 16 MiB (v5e) scoped-VMEM default for D up to a few thousand.
NUM_CHUNKS = 2         # leading "parallel" grid axis (shards across v7x's 2 TensorCores)


def _my_loss2_kernel(x_ref, tgt_ref, inp_ref, ae1_ref, ae2_ref, ae4_ref,
                     focal_out_ref, sse_out_ref,
                     focal_acc, sse_acc,
                     *, n_rows, tiles_per_chunk):
    c = pl.program_id(0)          # chunk (TensorCore) index
    t = pl.program_id(1)          # row-tile index within the chunk
    tile_n = x_ref.shape[0]

    @pl.when(t == 0)
    def _zero():
        focal_acc[...] = jnp.zeros_like(focal_acc)
        sse_acc[...] = jnp.zeros_like(sse_acc)

    # Logical row ids for this tile (unclamped) -> mask for remainder / padded tiles.
    row0 = (c * tiles_per_chunk + t) * tile_n
    rows = row0 + lax.broadcasted_iota(jnp.int32, (tile_n, 1), 0)
    valid = rows < n_rows                                     # (tile_n, 1) bool

    # ---- focal loss (gamma = 2), summed over valid rows -----------------------
    x = x_ref[...].astype(jnp.float32)                        # (tile_n, C)
    z = x - jnp.max(x, axis=-1, keepdims=True)
    lse = jnp.log(jnp.sum(jnp.exp(z), axis=-1, keepdims=True))
    logsoft = z - lse                                         # log_softmax

    labels = tgt_ref[...]                                     # (tile_n, 1) int32
    col_ids = lax.broadcasted_iota(jnp.int32, logsoft.shape, 1)
    onehot = col_ids == labels                                # gather-as-mask
    logp = jnp.sum(jnp.where(onehot, logsoft, 0.0), axis=-1, keepdims=True)
    p = jnp.exp(logp)
    omp = 1.0 - p                                             # (1-p)^2 as a product,
    focal = -(omp * omp) * logp                               # not exp(2*log(1-p))
    focal = jnp.where(valid, focal, 0.0)
    focal_acc[...] += jnp.sum(focal, keepdims=True)

    # ---- three reconstruction SSE terms (mean applied in the wrapper) ---------
    inp = inp_ref[...].astype(jnp.float32)                    # (tile_n, D)

    def sse(ref):
        d = inp - ref[...].astype(jnp.float32)
        return jnp.sum(jnp.where(valid, d * d, 0.0), keepdims=True)

    sse_acc[...] += sse(ae1_ref) + sse(ae2_ref) + sse(ae4_ref)

    # ---- flush this chunk's partial sums to its own output block --------------
    @pl.when(t == tiles_per_chunk - 1)
    def _flush():
        focal_out_ref[0] = focal_acc[...]
        sse_out_ref[0] = sse_acc[...]


def my_loss2(X, target, inputs, X_AE1, X_AE2, X_AE4, *, tile_n=None):
    """Pallas implementation of my_loss2.forward; returns an f32 scalar."""
    C = X.shape[-1]
    X2 = X.reshape(-1, C)                            # preds.view(-1, C)
    tgt2 = target.reshape(-1, 1).astype(jnp.int32)   # labels.view(-1, 1)
    N = X2.shape[0]
    D = inputs.shape[-1]
    inp2 = inputs.reshape(N, D)                      # keep original dtype; cast in-kernel
    ae1 = X_AE1.reshape(N, D)
    ae2 = X_AE2.reshape(N, D)
    ae4 = X_AE4.reshape(N, D)

    # Row tile: biggest that fits comfortably in scoped VMEM; multiple of 8 unless it
    # covers all rows.  (Tune DEFAULT_TILE_N up on v6e's 128 MiB VMEM if desired.)
    if tile_n is None:
        tile_n = DEFAULT_TILE_N
    tile_n = min(tile_n, N)
    if tile_n < N:
        tile_n = max(8, (tile_n // 8) * 8)
    num_tiles = pl.cdiv(N, tile_n)
    tiles_per_chunk = pl.cdiv(num_tiles, NUM_CHUNKS)

    def row_block(c, t):
        # Clamp fully out-of-range tiles onto the last real tile; the in-kernel row
        # mask (built from the *logical* index) zeroes their contribution.
        return jnp.minimum(c * tiles_per_chunk + t, num_tiles - 1)

    def row_spec(width):
        return pl.BlockSpec((tile_n, width), lambda c, t: (row_block(c, t), 0))

    out_spec = pl.BlockSpec((1, 1, 1), lambda c, t: (c, 0, 0))

    itemsize = lambda a: jnp.dtype(a.dtype).itemsize
    bytes_accessed = (N * C * itemsize(X2) + N * 4
                      + N * D * (itemsize(inp2) + itemsize(ae1)
                                 + itemsize(ae2) + itemsize(ae4))
                      + NUM_CHUNKS * 2 * 4)
    cost = pl.CostEstimate(
        flops=N * (6 * C + 9 * D),
        transcendentals=N * (C + 2),
        bytes_accessed=bytes_accessed,
    )

    kernel = functools.partial(_my_loss2_kernel, n_rows=N,
                               tiles_per_chunk=tiles_per_chunk)

    focal_part, sse_part = pl.pallas_call(
        kernel,
        out_shape=(
            jax.ShapeDtypeStruct((NUM_CHUNKS, 1, 1), jnp.float32),
            jax.ShapeDtypeStruct((NUM_CHUNKS, 1, 1), jnp.float32),
        ),
        grid_spec=pltpu.PrefetchScalarGridSpec(
            num_scalar_prefetch=0,
            grid=(NUM_CHUNKS, tiles_per_chunk),
            in_specs=[
                row_spec(C),   # logits
                row_spec(1),   # labels (int32 column, stays in VMEM)
                row_spec(D),   # inputs
                row_spec(D),   # X_AE1
                row_spec(D),   # X_AE2
                row_spec(D),   # X_AE4
            ],
            out_specs=[out_spec, out_spec],
            scratch_shapes=[
                pltpu.VMEM((1, 1), jnp.float32),   # focal partial sum
                pltpu.VMEM((1, 1), jnp.float32),   # SSE partial sum
            ],
        ),
        compiler_params=pltpu.CompilerParams(
            dimension_semantics=("parallel", "arbitrary"),
        ),
        cost_estimate=cost,
    )(X2, tgt2, inp2, ae1, ae2, ae4)

    focal_mean = jnp.sum(focal_part) / jnp.float32(N)
    mse_sum = jnp.sum(sse_part) / jnp.float32(N * D)
    return CLASSIFIC_LOSS_WEIGHT * focal_mean + mse_sum


def _reference(X, target, inputs, X_AE1, X_AE2, X_AE4):
    # pure-JAX reference for sanity checking
    C = X.shape[-1]
    X2 = X.reshape(-1, C).astype(jnp.float32)
    logsoft = jax.nn.log_softmax(X2, axis=1)
    logp = jnp.take_along_axis(logsoft, target.reshape(-1, 1), axis=1)
    p = jnp.exp(logp)
    focal = jnp.mean(-((1.0 - p) ** 2) * logp)
    inp = inputs.astype(jnp.float32)
    mse = lambda a: jnp.mean((inp - a.astype(jnp.float32)) ** 2)
    return (CLASSIFIC_LOSS_WEIGHT * focal
            + mse(X_AE1) + mse(X_AE2) + mse(X_AE4))


if __name__ == "__main__":
    key = jax.random.PRNGKey(0)
    N, C, D = 8, 32, 64  # batch, num_classes, feature dim

    k1, k2, k3, k4, k5, k6 = jax.random.split(key, 6)
    X = jax.random.normal(k1, (N, C), dtype=jnp.float32)          # logits
    target = jax.random.randint(k2, (N,), 0, C, dtype=jnp.int32)  # labels
    inputs = jax.random.normal(k3, (N, D), dtype=jnp.float32)
    X_AE1 = jax.random.normal(k4, (N, D), dtype=jnp.float32)
    X_AE2 = jax.random.normal(k5, (N, D), dtype=jnp.float32)
    X_AE4 = jax.random.normal(k6, (N, D), dtype=jnp.float32)

    loss = my_loss2(X, target, inputs, X_AE1, X_AE2, X_AE4)
    jax.block_until_ready(loss)
    ref = _reference(X, target, inputs, X_AE1, X_AE2, X_AE4)
    assert jnp.allclose(loss, ref, rtol=1e-5, atol=1e-5), (loss, ref)

    # Second case: exercise the multi-tile path (remainder tile + fully padded
    # tile in the second chunk) with a small explicit tile size.
    N2 = 20
    k1, k2, k3, k4, k5, k6 = jax.random.split(jax.random.PRNGKey(1), 6)
    X_b = jax.random.normal(k1, (N2, C), dtype=jnp.float32)
    t_b = jax.random.randint(k2, (N2,), 0, C, dtype=jnp.int32)
    in_b = jax.random.normal(k3, (N2, D), dtype=jnp.float32)
    a1_b = jax.random.normal(k4, (N2, D), dtype=jnp.float32)
    a2_b = jax.random.normal(k5, (N2, D), dtype=jnp.float32)
    a4_b = jax.random.normal(k6, (N2, D), dtype=jnp.float32)
    loss_b = my_loss2(X_b, t_b, in_b, a1_b, a2_b, a4_b, tile_n=8)
    jax.block_until_ready(loss_b)
    ref_b = _reference(X_b, t_b, in_b, a1_b, a2_b, a4_b)
    assert jnp.allclose(loss_b, ref_b, rtol=1e-5, atol=1e-5), (loss_b, ref_b)

    print("KERNEL_OK")
</pallas_src>

<mosaic_0001>
module attributes {stable_mosaic.version = 11 : i64} {
  func.func @_my_loss2_kernel(%arg0: i32, %arg1: i32, %arg2: memref<8x32xf32, #tpu.memory_space<vmem>>, %arg3: memref<8x1xi32, #tpu.memory_space<vmem>>, %arg4: memref<8x64xf32, #tpu.memory_space<vmem>>, %arg5: memref<8x64xf32, #tpu.memory_space<vmem>>, %arg6: memref<8x64xf32, #tpu.memory_space<vmem>>, %arg7: memref<8x64xf32, #tpu.memory_space<vmem>>, %arg8: memref<1x1x1xf32, #tpu.memory_space<vmem>>, %arg9: memref<1x1x1xf32, #tpu.memory_space<vmem>>, %arg10: memref<1x1xf32, #tpu.memory_space<vmem>>, %arg11: memref<1x1xf32, #tpu.memory_space<vmem>>) attributes {dimension_semantics = [#tpu.dimension_semantics<parallel>, #tpu.dimension_semantics<arbitrary>], iteration_bounds = array<i64: 2, 1>, scalar_prefetch = 0 : i64, scratch_operands = 2 : i64, tpu.core_type = #tpu.core_type<tc>, window_params = [{transform_indices = @transform_0, window_bounds = array<i64: 8, 32>}, {transform_indices = @transform_1, window_bounds = array<i64: 8, 1>}, {transform_indices = @transform_2, window_bounds = array<i64: 8, 64>}, {transform_indices = @transform_3, window_bounds = array<i64: 8, 64>}, {transform_indices = @transform_4, window_bounds = array<i64: 8, 64>}, {transform_indices = @transform_5, window_bounds = array<i64: 8, 64>}, {transform_indices = @transform_6, window_bounds = array<i64: 1, 1, 1>}, {transform_indices = @transform_7, window_bounds = array<i64: 1, 1, 1>}]} {
    %c0_i32 = arith.constant 0 : i32
    %0 = arith.cmpi eq, %arg1, %c0_i32 : i32
    %1 = arith.extui %0 : i1 to i32
    %c0_i32_0 = arith.constant 0 : i32
    %2 = arith.cmpi ne, %1, %c0_i32_0 : i32
    scf.if %2 {
      %cst_36 = arith.constant 0.000000e+00 : f32
      %92 = vector.broadcast %cst_36 : f32 to vector<1x1xf32>
      %c0_37 = arith.constant 0 : index
      %c0_38 = arith.constant 0 : index
      %93 = vector.load %arg10[%c0_37, %c0_38] : memref<1x1xf32, #tpu.memory_space<vmem>>, vector<1x1xf32>
      tpu.vector_store %arg10[%c0_37, %c0_38], %92 {strides = array<i32>} : memref<1x1xf32, #tpu.memory_space<vmem>>, vector<1x1xf32>,
      %cst_39 = arith.constant 0.000000e+00 : f32
      %94 = vector.broadcast %cst_39 : f32 to vector<1x1xf32>
      %c0_40 = arith.constant 0 : index
      %c0_41 = arith.constant 0 : index
      %95 = vector.load %arg11[%c0_40, %c0_41] : memref<1x1xf32, #tpu.memory_space<vmem>>, vector<1x1xf32>
      tpu.vector_store %arg11[%c0_40, %c0_41], %94 {strides = array<i32>} : memref<1x1xf32, #tpu.memory_space<vmem>>, vector<1x1xf32>,
    } else {
    }
    %c1_i32 = arith.constant 1 : i32
    %3 = arith.muli %arg0, %c1_i32 : i32
    %4 = arith.addi %3, %arg1 : i32
    %c8_i32 = arith.constant 8 : i32
    %5 = arith.muli %4, %c8_i32 : i32
    %6 = tpu.iota {dimensions = array<i32: 0>} : vector<8x1xi32>
    %7 = vector.broadcast %5 : i32 to vector<8x1xi32>
    %8 = arith.addi %7, %6 : vector<8x1xi32>
    %c8_i32_1 = arith.constant 8 : i32
    %9 = vector.broadcast %c8_i32_1 : i32 to vector<8x1xi32>
    %10 = arith.cmpi slt, %8, %9 : vector<8x1xi32>
    %c0 = arith.constant 0 : index
    %c0_2 = arith.constant 0 : index
    %11 = vector.load %arg2[%c0, %c0_2] : memref<8x32xf32, #tpu.memory_space<vmem>>, vector<8x32xf32>
    %cst = arith.constant dense<0xFF800000> : vector<8xf32>
    %12 = vector.multi_reduction <maximumf>, %11, %cst [1] : vector<8x32xf32> to vector<8xf32>
    %13 = vector.shape_cast %12 : vector<8xf32> to vector<8x1xf32>
    %14 = vector.broadcast %13 : vector<8x1xf32> to vector<8x32xf32>
    %15 = arith.subf %11, %14 : vector<8x32xf32>
    %16 = math.exp %15 : vector<8x32xf32>
    %cst_3 = arith.constant dense<0.000000e+00> : vector<8xf32>
    %17 = vector.multi_reduction <add>, %16, %cst_3 [1] : vector<8x32xf32> to vector<8xf32>
    %18 = vector.shape_cast %17 : vector<8xf32> to vector<8x1xf32>
    %19 = math.log %18 : vector<8x1xf32>
    %20 = vector.broadcast %19 : vector<8x1xf32> to vector<8x32xf32>
    %21 = arith.subf %15, %20 : vector<8x32xf32>
    %c0_4 = arith.constant 0 : index
    %c0_5 = arith.constant 0 : index
    %22 = vector.load %arg3[%c0_4, %c0_5] : memref<8x1xi32, #tpu.memory_space<vmem>>, vector<8x1xi32>
    %23 = tpu.iota {dimensions = array<i32: 1>} : vector<8x32xi32>
    %24 = vector.broadcast %22 : vector<8x1xi32> to vector<8x32xi32>
    %25 = arith.cmpi eq, %23, %24 : vector<8x32xi32>
    %cst_6 = arith.constant 0.000000e+00 : f32
    %26 = vector.broadcast %cst_6 : f32 to vector<8x32xf32>
    %27 = arith.select %25, %21, %26 : vector<8x32xi1>, vector<8x32xf32>
    %cst_7 = arith.constant dense<0.000000e+00> : vector<8xf32>
    %28 = vector.multi_reduction <add>, %27, %cst_7 [1] : vector<8x32xf32> to vector<8xf32>
    %29 = vector.shape_cast %28 : vector<8xf32> to vector<8x1xf32>
    %30 = math.exp %29 : vector<8x1xf32>
    %cst_8 = arith.constant 1.000000e+00 : f32
    %31 = vector.broadcast %cst_8 : f32 to vector<8x1xf32>
    %32 = arith.subf %31, %30 : vector<8x1xf32>
    %33 = arith.mulf %32, %32 : vector<8x1xf32>
    %cst_9 = arith.constant 0.000000e+00 : f32
    %34 = vector.broadcast %cst_9 : f32 to vector<8x1xf32>
    %35 = arith.subf %34, %33 : vector<8x1xf32>
    %36 = arith.mulf %35, %29 : vector<8x1xf32>
    %cst_10 = arith.constant 0.000000e+00 : f32
    %37 = vector.broadcast %cst_10 : f32 to vector<8x1xf32>
    %38 = arith.select %10, %36, %37 : vector<8x1xi1>, vector<8x1xf32>
    %c0_11 = arith.constant 0 : index
    %c0_12 = arith.constant 0 : index
    %39 = vector.load %arg10[%c0_11, %c0_12] : memref<1x1xf32, #tpu.memory_space<vmem>>, vector<1x1xf32>
    %40 = vector.shape_cast %38 : vector<8x1xf32> to vector<1x8x1xf32>
    %cst_13 = arith.constant dense<0.000000e+00> : vector<1xf32>
    %41 = vector.multi_reduction <add>, %40, %cst_13 [1, 2] : vector<1x8x1xf32> to vector<1xf32>
    %42 = vector.shape_cast %41 : vector<1xf32> to vector<1x1x1xf32>
    %43 = vector.extract %42[0, 0, 0] : f32 from vector<1x1x1xf32>
    %44 = vector.broadcast %43 : f32 to vector<1x1xf32>
    %45 = arith.addf %39, %44 : vector<1x1xf32>
    %c0_14 = arith.constant 0 : index
    %c0_15 = arith.constant 0 : index
    %46 = vector.load %arg10[%c0_14, %c0_15] : memref<1x1xf32, #tpu.memory_space<vmem>>, vector<1x1xf32>
    tpu.vector_store %arg10[%c0_14, %c0_15], %45 {strides = array<i32>} : memref<1x1xf32, #tpu.memory_space<vmem>>, vector<1x1xf32>,
    %c0_16 = arith.constant 0 : index
    %c0_17 = arith.constant 0 : index
    %47 = vector.load %arg4[%c0_16, %c0_17] : memref<8x64xf32, #tpu.memory_space<vmem>>, vector<8x64xf32>
    %c0_18 = arith.constant 0 : index
    %c0_19 = arith.constant 0 : index
    %48 = vector.load %arg11[%c0_18, %c0_19] : memref<1x1xf32, #tpu.memory_space<vmem>>, vector<1x1xf32>
    %c0_20 = arith.constant 0 : index
    %c0_21 = arith.constant 0 : index
    %49 = vector.load %arg5[%c0_20, %c0_21] : memref<8x64xf32, #tpu.memory_space<vmem>>, vector<8x64xf32>
    %50 = arith.subf %47, %49 : vector<8x64xf32>
    %51 = arith.mulf %50, %50 : vector<8x64xf32>
    %cst_22 = arith.constant 0.000000e+00 : f32
    %52 = vector.shape_cast %10 : vector<8x1xi1> to vector<8x1xi1>
    %53 = vector.broadcast %52 : vector<8x1xi1> to vector<8x64xi1>
    %54 = vector.broadcast %cst_22 : f32 to vector<8x64xf32>
    %55 = arith.select %53, %51, %54 : vector<8x64xi1>, vector<8x64xf32>
    %56 = vector.shape_cast %55 : vector<8x64xf32> to vector<1x8x64xf32>
    %cst_23 = arith.constant dense<0.000000e+00> : vector<1xf32>
    %57 = vector.multi_reduction <add>, %56, %cst_23 [1, 2] : vector<1x8x64xf32> to vector<1xf32>
    %58 = vector.shape_cast %57 : vector<1xf32> to vector<1x1x1xf32>
    %59 = vector.extract %58[0, 0, 0] : f32 from vector<1x1x1xf32>
    %60 = vector.broadcast %59 : f32 to vector<1x1xf32>
    %c0_24 = arith.constant 0 : index
    %c0_25 = arith.constant 0 : index
    %61 = vector.load %arg6[%c0_24, %c0_25] : memref<8x64xf32, #tpu.memory_space<vmem>>, vector<8x64xf32>
    %62 = arith.subf %47, %61 : vector<8x64xf32>
    %63 = arith.mulf %62, %62 : vector<8x64xf32>
    %cst_26 = arith.constant 0.000000e+00 : f32
    %64 = vector.shape_cast %10 : vector<8x1xi1> to vector<8x1xi1>
    %65 = vector.broadcast %64 : vector<8x1xi1> to vector<8x64xi1>
    %66 = vector.broadcast %cst_26 : f32 to vector<8x64xf32>
    %67 = arith.select %65, %63, %66 : vector<8x64xi1>, vector<8x64xf32>
    %68 = vector.shape_cast %67 : vector<8x64xf32> to vector<1x8x64xf32>
    %cst_27 = arith.constant dense<0.000000e+00> : vector<1xf32>
    %69 = vector.multi_reduction <add>, %68, %cst_27 [1, 2] : vector<1x8x64xf32> to vector<1xf32>
    %70 = vector.shape_cast %69 : vector<1xf32> to vector<1x1x1xf32>
    %71 = vector.extract %70[0, 0, 0] : f32 from vector<1x1x1xf32>
    %72 = vector.broadcast %71 : f32 to vector<1x1xf32>
    %73 = arith.addf %60, %72 : vector<1x1xf32>
    %c0_28 = arith.constant 0 : index
    %c0_29 = arith.constant 0 : index
    %74 = vector.load %arg7[%c0_28, %c0_29] : memref<8x64xf32, #tpu.memory_space<vmem>>, vector<8x64xf32>
    %75 = arith.subf %47, %74 : vector<8x64xf32>
    %76 = arith.mulf %75, %75 : vector<8x64xf32>
    %cst_30 = arith.constant 0.000000e+00 : f32
    %77 = vector.shape_cast %10 : vector<8x1xi1> to vector<8x1xi1>
    %78 = vector.broadcast %77 : vector<8x1xi1> to vector<8x64xi1>
    %79 = vector.broadcast %cst_30 : f32 to vector<8x64xf32>
    %80 = arith.select %78, %76, %79 : vector<8x64xi1>, vector<8x64xf32>
    %81 = vector.shape_cast %80 : vector<8x64xf32> to vector<1x8x64xf32>
    %cst_31 = arith.constant dense<0.000000e+00> : vector<1xf32>
    %82 = vector.multi_reduction <add>, %81, %cst_31 [1, 2] : vector<1x8x64xf32> to vector<1xf32>
    %83 = vector.shape_cast %82 : vector<1xf32> to vector<1x1x1xf32>
    %84 = vector.extract %83[0, 0, 0] : f32 from vector<1x1x1xf32>
    %85 = vector.broadcast %84 : f32 to vector<1x1xf32>
    %86 = arith.addf %73, %85 : vector<1x1xf32>
    %87 = arith.addf %48, %86 : vector<1x1xf32>
    %c0_32 = arith.constant 0 : index
    %c0_33 = arith.constant 0 : index
    %88 = vector.load %arg11[%c0_32, %c0_33] : memref<1x1xf32, #tpu.memory_space<vmem>>, vector<1x1xf32>
    tpu.vector_store %arg11[%c0_32, %c0_33], %87 {strides = array<i32>} : memref<1x1xf32, #tpu.memory_space<vmem>>, vector<1x1xf32>,
    %c0_i32_34 = arith.constant 0 : i32
    %89 = arith.cmpi eq, %arg1, %c0_i32_34 : i32
    %90 = arith.extui %89 : i1 to i32
    %c0_i32_35 = arith.constant 0 : i32
    %91 = arith.cmpi ne, %90, %c0_i32_35 : i32
    scf.if %91 {
      %c0_36 = arith.constant 0 : index
      %c0_37 = arith.constant 0 : index
      %92 = vector.load %arg10[%c0_36, %c0_37] : memref<1x1xf32, #tpu.memory_space<vmem>>, vector<1x1xf32>
      %c0_38 = arith.constant 0 : index
      %c0_39 = arith.constant 0 : index
      %c0_40 = arith.constant 0 : index
      %93 = vector.load %arg8[%c0_38, %c0_39, %c0_40] : memref<1x1x1xf32, #tpu.memory_space<vmem>>, vector<1x1x1xf32>
      %94 = vector.shape_cast %93 : vector<1x1x1xf32> to vector<1x1xf32>
      %95 = vector.shape_cast %92 : vector<1x1xf32> to vector<1x1x1xf32>
      tpu.vector_store %arg8[%c0_38, %c0_39, %c0_40], %95 {strides = array<i32>} : memref<1x1x1xf32, #tpu.memory_space<vmem>>, vector<1x1x1xf32>,
      %c0_41 = arith.constant 0 : index
      %c0_42 = arith.constant 0 : index
      %96 = vector.load %arg11[%c0_41, %c0_42] : memref<1x1xf32, #tpu.memory_space<vmem>>, vector<1x1xf32>
      %c0_43 = arith.constant 0 : index
      %c0_44 = arith.constant 0 : index
      %c0_45 = arith.constant 0 : index
      %97 = vector.load %arg9[%c0_43, %c0_44, %c0_45] : memref<1x1x1xf32, #tpu.memory_space<vmem>>, vector<1x1x1xf32>
      %98 = vector.shape_cast %97 : vector<1x1x1xf32> to vector<1x1xf32>
      %99 = vector.shape_cast %96 : vector<1x1xf32> to vector<1x1x1xf32>
      tpu.vector_store %arg9[%c0_43, %c0_44, %c0_45], %99 {strides = array<i32>} : memref<1x1x1xf32, #tpu.memory_space<vmem>>, vector<1x1x1xf32>,
    } else {
    }
    return
  }
  func.func @transform_0(%arg0: i32, %arg1: i32) -> (i32, i32) {
    %c1_i32 = arith.constant 1 : i32
    %0 = arith.muli %arg0, %c1_i32 : i32
    %1 = arith.addi %0, %arg1 : i32
    %c0_i32 = arith.constant 0 : i32
    %2 = arith.minsi %1, %c0_i32 : i32
    %c0_i32_0 = arith.constant 0 : i32
    %c0_i32_1 = arith.constant 0 : i32
    return %2, %c0_i32_0 : i32, i32
  }
  func.func @transform_1(%arg0: i32, %arg1: i32) -> (i32, i32) {
    %c1_i32 = arith.constant 1 : i32
    %0 = arith.muli %arg0, %c1_i32 : i32
    %1 = arith.addi %0, %arg1 : i32
    %c0_i32 = arith.constant 0 : i32
    %2 = arith.minsi %1, %c0_i32 : i32
    %c0_i32_0 = arith.constant 0 : i32
    %c0_i32_1 = arith.constant 0 : i32
    return %2, %c0_i32_0 : i32, i32
  }
  func.func @transform_2(%arg0: i32, %arg1: i32) -> (i32, i32) {
    %c1_i32 = arith.constant 1 : i32
    %0 = arith.muli %arg0, %c1_i32 : i32
    %1 = arith.addi %0, %arg1 : i32
    %c0_i32 = arith.constant 0 : i32
    %2 = arith.minsi %1, %c0_i32 : i32
    %c0_i32_0 = arith.constant 0 : i32
    %c0_i32_1 = arith.constant 0 : i32
    return %2, %c0_i32_0 : i32, i32
  }
  func.func @transform_3(%arg0: i32, %arg1: i32) -> (i32, i32) {
    %c1_i32 = arith.constant 1 : i32
    %0 = arith.muli %arg0, %c1_i32 : i32
    %1 = arith.addi %0, %arg1 : i32
    %c0_i32 = arith.constant 0 : i32
    %2 = arith.minsi %1, %c0_i32 : i32
    %c0_i32_0 = arith.constant 0 : i32
    %c0_i32_1 = arith.constant 0 : i32
    return %2, %c0_i32_0 : i32, i32
  }
  func.func @transform_4(%arg0: i32, %arg1: i32) -> (i32, i32) {
    %c1_i32 = arith.constant 1 : i32
    %0 = arith.muli %arg0, %c1_i32 : i32
    %1 = arith.addi %0, %arg1 : i32
    %c0_i32 = arith.constant 0 : i32
    %2 = arith.minsi %1, %c0_i32 : i32
    %c0_i32_0 = arith.constant 0 : i32
    %c0_i32_1 = arith.constant 0 : i32
    return %2, %c0_i32_0 : i32, i32
  }
  func.func @transform_5(%arg0: i32, %arg1: i32) -> (i32, i32) {
    %c1_i32 = arith.constant 1 : i32
    %0 = arith.muli %arg0, %c1_i32 : i32
    %1 = arith.addi %0, %arg1 : i32
    %c0_i32 = arith.constant 0 : i32
    %2 = arith.minsi %1, %c0_i32 : i32
    %c0_i32_0 = arith.constant 0 : i32
    %c0_i32_1 = arith.constant 0 : i32
    return %2, %c0_i32_0 : i32, i32
  }
  func.func @transform_6(%arg0: i32, %arg1: i32) -> (i32, i32, i32) {
    %c0_i32 = arith.constant 0 : i32
    %c0_i32_0 = arith.constant 0 : i32
    %c0_i32_1 = arith.constant 0 : i32
    return %arg0, %c0_i32, %c0_i32_0 : i32, i32, i32
  }
  func.func @transform_7(%arg0: i32, %arg1: i32) -> (i32, i32, i32) {
    %c0_i32 = arith.constant 0 : i32
    %c0_i32_0 = arith.constant 0 : i32
    %c0_i32_1 = arith.constant 0 : i32
    return %arg0, %c0_i32, %c0_i32_0 : i32, i32, i32
  }
}

</mosaic_0001>

<bundles_post_ra>
// kernel: tpu_custom_call.1
= control target key start
LH: loop header
LB: loop body
LE: loop exit
PB: predicated region body
PF: predicated region fallthrough
CT: control target
= control target key end

     0   :  { %13 = vsyncpa [#allocation5], 0  ;;  %s1241_s0 = inlined_call_operand.vmem [shape: f32[8,32], index: 0, kind: input, shape index: {}]   ;;  %s1242_s1 = inlined_call_operand.vmem [shape: s32[8,1], index: 1, kind: input, shape index: {}]   ;;  %s1243_s2 = inlined_call_operand.vmem [shape: f32[8,64], index: 2, kind: input, shape index: {}]   ;;  %s1244_s3 = inlined_call_operand.hbm [shape: f32[8,64], index: 3, kind: input, shape index: {}]   ;;  %s1245_s4 = inlined_call_operand.vmem [shape: f32[8,64], index: 4, kind: input, shape index: {}]   ;;  %s1246_s5 = inlined_call_operand.hbm [shape: f32[8,64], index: 5, kind: input, shape index: {}]   ;;  %s1247_s6 = inlined_call_operand.vmem [shape: f32[2,1,1], index: 6, kind: output, shape index: {0}]   ;;  %s1248_s7 = inlined_call_operand.vmem [shape: f32[2,1,1], index: 7, kind: output, shape index: {1}]  }
   0x1   :  { %15 = vsyncpa [#allocation5 + $0x1], 0 }
   0x2   :  { %16 = vsyncpa [#allocation7], 0 }
   0x3   :  { %18 = vsyncpa [#allocation7 + $0x1], 0  ;;  %s1077_s24 = smov 0   ;;  %s1079_s25 = smov 0  }
   0x4   :  { %s1081_s26 = smov 0   ;;  %s1083_s27 = smov 0  }
   0x5   :  { %s1085_s28 = smov 0  }
   0x6 LB: > { %s812_s29 = sadd.s32 4294967295, %s1031_s28   ;;  %s36_s30 = sadd.s32 1, %s1027_s27  ;;  %s1031_s28 = sphi %s1085_s28, %s24_s28   ;;  %s1027_s27 = sphi %s1083_s27, %s1259_s27   ;;  %s1023_s26 = sphi %s1081_s26, %s1258_s26   ;;  %s1019_s25 = sphi %s1079_s25, %s1231_s25   ;;  %s1015_s24 = sphi %s1077_s24, %s1257_s24  }
   0x7   : > { %p38_p0 = scmp.ge.s32.totalorder %s36_s30, 2  ;;  %p1012_p1 = scmp.ne.s32.totalorder %s1019_s25, 0 }
   0x8   : > { %p153_p2 = scmp.eq.s32.totalorder %s1031_s28, 0  ;;  %p158_p3 = scmp.ne.s32.totalorder %s1019_s25, %s1015_s24 }
   0x9   : > { %s1261_s30 = smov (%p38_p0, %s36_s30), 0  ;;  %p159_p4 = scmp.eq.s32.totalorder %s812_s29, 0 }
   0xa   : > { %p154_p5 = por %p1012_p1, %p153_p2  ;;  %p861_p7 = scmp.lt.s32.totalorder %s1031_s28, 2 }
   0xb   : > { %p1107_p6 = por %p159_p4, %p158_p3  ;;  %s1033_s9 = smov [#allocation4]  }
   0xc   : > { %s351_s10 = sshll.u32 %s1033_s9, 4  ;;  %p1112_p8 = pnand %p861_p7, %p154_p5  ;;  %s352_s10 = int_to_ptr.vmem [resolvable:$true] %s351_s10 }
   0xd   : > { %s1250_s8 = scalar_select %p1107_p6, 1, 0 }
   0xe   : > { %s920_s14 = scalar_lea.hbm %s1244_s3, 128  ;;  %p922_p12 = pneg %p1112_p8 }
   0xf   : > { %p921_p11 = scmp.ne.s32.totalorder %s1244_s3, %s920_s14  ;;  %p927_p1 = scmp.lt.u32.totalorder %s920_s14, %s920_s14 }
  0x10   : > { %p929_p2 = scmp.lt.u32.totalorder %s920_s14, %s1244_s3 }
  0x11   : > { %p923_p13 = pnand %p922_p12, %p921_p11 }
  0x12   : > { %p930_p3 = por %p929_p2, %p927_p1 }
  0x13   : > { %p924_p0 = pneg %p923_p13 }
  0x15   : > { %p931_p4 = pnand %p930_p3, %p924_p0 }
  0x17   : > { %934 = shalt.err (!%p931_p4)
}
  0x18   : > { %s935_s19 = scalar_lea.vmem %s352_s10, 128  ;;  %s942_s20 = scalar_lea.vmem %s352_s10, 256 }
  0x19   : > { %p936_p5 = scmp.ne.s32.totalorder %s352_s10, %s935_s19  ;;  %p943_p10 = scmp.lt.s32.totalorder %s352_s10, %s352_s10 }
  0x1a   : > { %p944_p6 = scmp.lt.s32.totalorder %s942_s20, %s935_s19 }
  0x1b   : > { %p938_p7 = pnand %p936_p5, %p922_p12 }
  0x1c   : > { %p945_p11 = por %p944_p6, %p943_p10 }
  0x1d   : > { %p939_p9 = pneg %p938_p7 }
  0x1f   : > { %p946_p13 = pnand %p945_p11, %p939_p9 }
  0x21   : > { %949 = shalt.err (!%p946_p13)
}
  0x22   : > { %857 = dma.hbm_to_vmem [thread:$0]  (!%p1112_p8), %s1244_s3, 128, %s352_s10, [#allocation5]  }
  0x23   : > { %p1252_p0 = scmp.lt.s32.totalorder %s1031_s28, 3  ;;  %p1253_p1 = scmp.ge.s32.totalorder %s1031_s28, 1 }
  0x24   : > { %s1034_s24 = smov [#allocation6]   ;;  %s950_s13 = scalar_lea.hbm %s1246_s5, 128 }
  0x25   : > { %p1144_p2 = pnand %p1253_p1, %p1252_p0  ;;  %s385_s29 = sshll.u32 %s1034_s24, 4  ;;  %s386_s29 = int_to_ptr.vmem [resolvable:$true] %s385_s29 }
  0x26   : > { %p951_p6 = scmp.ne.s32.totalorder %s1246_s5, %s950_s13  ;;  %p957_p3 = scmp.lt.u32.totalorder %s950_s13, %s950_s13 }
  0x27   : > { %s1254_s23 = scalar_select %p1144_p2, 1, 0 }
  0x28   : > { %p953_p9 = pnand %p951_p6, %p922_p12  ;;  %p959_p4 = scmp.lt.u32.totalorder %s950_s13, %s1246_s5 }
  0x2a   : > { %p954_p10 = pneg %p953_p9  ;;  %p960_p5 = por %p959_p4, %p957_p3 }
  0x2c   : > { %p961_p7 = pnand %p960_p5, %p954_p10 }
  0x2e   : > { %964 = shalt.err (!%p961_p7)
}
  0x2f   : > { %s965_s17 = scalar_lea.vmem %s386_s29, 128  ;;  %s972_s18 = scalar_lea.vmem %s386_s29, 256 }
  0x30   : > { %p966_p11 = scmp.ne.s32.totalorder %s386_s29, %s965_s17  ;;  %p973_p1 = scmp.lt.s32.totalorder %s386_s29, %s386_s29 }
  0x31   : > { %p974_p2 = scmp.lt.s32.totalorder %s972_s18, %s965_s17 }
  0x32   : > { %p968_p13 = pnand %p966_p11, %p922_p12 }
  0x33   : > { %p975_p6 = por %p974_p2, %p973_p1 }
  0x34   : > { %p969_p0 = pneg %p968_p13 }
  0x36   : > { %p976_p9 = pnand %p975_p6, %p969_p0 }
  0x38   : > { %979 = shalt.err (!%p976_p9)
}
  0x39   : > { %860 = dma.hbm_to_vmem [thread:$0]  (!%p1112_p8), %s1246_s5, 128, %s386_s29, [#allocation7]  }
  0x3a   : > { %p1255_p10 = scmp.ne.s32.totalorder %s1254_s23, 0 }
  0x3b   : > { %s396_s21 = sand.u32 (!%p1255_p10), 1, %s1019_s25   ;;  %p1256_p12 = scmp.ne.s32.totalorder (!%p1255_p10), %s1250_s8, 0 }
  0x3c   : > { %394 = sbr.rel (%p1255_p10) target bundleno = 783 (0x30f), region = 44  ;;  %s821_s22 = sshll.u32 (!%p1255_p10), %s396_s21, 3 }
  0x3d   : > { %s397_s24 = scalar_lea.sflag (!%p1255_p10), [#allocation5], %s396_s21  ;;  %s1171_s9 = scalar_lea.vmem (!%p1255_p10), [#allocation4], %s821_s22 }
  0x43   : > { %1005 = dma.done.wait (%p1256_p12), %s397_s24, 128  }
  0x44   : > { %1007 = vsyncadd (%p1256_p12), %s397_s24, 4294967168  ;;  %s406_s11 = scalar_lea.sflag [#allocation7], %s396_s21  ;;  %s1177_s12 = scalar_lea.vmem [#allocation6], %s821_s22 }
  0x45   : > { %1009 = dma.done.wait (%p1256_p12), %s406_s11, 128  }
  0x46   : > { %1011 = vsyncadd (%p1256_p12), %s406_s11, 4294967168  ;;  %p475_p8 = scmp.lt.s32.totalorder %s1023_s26, 0  ;;  %vm541_vm0 = vcmask 261120   ;;  %v1035_v2 = vmov 0   ;;  %v535_v10 = vlaneseq  ;;  %s839_s20 = sshll.u32 %s1023_s26, 3  ;;  %v590_v20 = vld [vmem:[%s1171_s9] sm:$0xff] }
  0x47   : > { %912 = vset.pattern.permute.xlu1 %v1035_v2  ;;  %913 = vset.pattern.permute.xlu0 %v1035_v2  ;;  %v537_v21 = vstv %s839_s20  ;;  %vm596_vm3 = vcmask 523264   ;;  %v624_v32 = vld [vmem:[%s1177_s12] sm:$0xff]  ;;  %vm573_vm4 = vcmask 7168   ;;  %vm530_vm5 = vcmask 0   ;;  %p520_p2 = scmp.lt.s32.totalorder %s1023_s26, 1 }
  0x48   : > { %s476_s23 = scalar_select %p475_p8, %s1023_s26, 0  ;;  %v556_v11 = vand.u32 127, %v535_v10  ;;  %v536_v18 = vshrl.u32 %v535_v10, 7  ;;  %v1036_v46 = vmov 0.0  }
  0x49   : > { %531 = vst.msk [vmem:[#allocation2] sm:$0x1] %vm530_vm5, %v1036_v46  ;;  %532 = vst.msk [vmem:[#allocation3] sm:$0x1] %vm530_vm5, %v1036_v46  ;;  %s1265_s26 = smov (!%p520_p2, %s1023_s26), 1 }
  0x4a   : > { %s1263_s23 = smov (!%p475_p8, %s476_s23), 0  ;;  %v538_v23 = vadd.s32 %v537_v21, %v536_v18  ;;  %s522_s14 = scalar_lea.vmem %s1247_s6, %s1265_s26 }
  0x4b   : > { %s1185_s29 = sshll.u32 %s1263_s23, 3  ;;  %s525_s10 = scalar_lea.vmem %s1248_s7, %s1265_s26 }
  0x4c   : > { %s480_s15 = scalar_lea.vmem %s1241_s0, %s1185_s29  ;;  %s490_s16 = scalar_lea.vmem %s1242_s1, %s1185_s29  ;;  %vm539_vm2 = vcmp.lt.s32.totalorder %v538_v23, 8 }
  0x4d   : > { %v540_v0 = vld [vmem:[%s480_s15] sm:$0xff]  ;;  %s500_s19 = scalar_lea.vmem %s1243_s2, %s1185_s29  ;;  %s513_s24 = scalar_lea.vmem %s1245_s4, %s1185_s29 }
  0x4e   : > { %v542_v1 = vsel %vm541_vm0, %v540_v0, -inf  ;;  %v554_v3 = vld [vmem:[%s490_s16] sm:$0xff] }
  0x4f   : > { %543 = vmax.xlane.f32.xlu0 %v542_v1  ;;  %558 = vperm.xlu1 %912, %v554_v3   ;;  %v588_v19 = vld [vmem:[%s500_s19] sm:$0xff] }
  0x50   : > { %v591_v22 = vsub.f32 %v588_v19, %v590_v20  ;;  %v608_v25 = vld [vmem:[%s513_s24] sm:$0xff]  ;;  %v625_v33 = vsub.f32 %v588_v19, %v624_v32 }
  0x51   : > { %v609_v27 = vsub.f32 %v588_v19, %v608_v25 }
  0x52   : > { %v592_v24 = vmul.f32 %v591_v22, %v591_v22  ;;  %v626_v34 = vmul.f32 %v625_v33, %v625_v33 }
  0x53   : > { %v610_v29 = vmul.f32 %v609_v27, %v609_v27 }
  0x54   : > { %v595_v26 = vsel %vm539_vm2, %v592_v24, 0.0  ;;  %v627_v35 = vsel %vm539_vm2, %v626_v34, 0.0 }
  0x55   : > { %v597_v28 = vsel %vm596_vm3, %v595_v26, 0.0  ;;  %v611_v30 = vsel %vm539_vm2, %v610_v29, 0.0  ;;  %v628_v36 = vsel %vm596_vm3, %v627_v35, 0.0 }
  0x56   : > { %v612_v31 = vsel %vm596_vm3, %v611_v30, 0.0 }
  0xce   : > { %v559_v12 = vpop.permute.xlu1 %558 }
  0xcf   : > { %vm560_vm1 = vcmp.eq.s32.totalorder %v556_v11, %v559_v12  ;;  %v572_v11 = vld [vmem:[#allocation2] sm:$0x1] }
  0xdc   : > { %v544_v4 = vpop.xlane.xlu0 %543 }
  0xdd   : > { %v545_v5 = vsub.f32 %v540_v0, %v544_v4 }
  0xdf   : > { %v546_v6 = vmul.f32 1.442695, %v545_v5 }
  0xe1   : > { %914 = vpow2.f32 %v546_v6 }
  0xeb   : > { %v915_v7 = vpop.eup %914 }
  0xec   : > { %v548_v8 = vsel %vm541_vm0, %v915_v7, 0.0 }
  0xed   : > { %549 = vadd.xlane.f32.xlu0 %v548_v8 }
  0xf1   : > { %598 = vadd.xlane.f32.xlu0 %v597_v28 }
  0xf5   : > { %613 = vadd.xlane.f32.xlu0 %v612_v31 }
 0x17a   : > { %v550_v9 = vpop.xlane.xlu0 %549 }
 0x17b   : > { %916 = vlog2.f32 %v550_v9 }
 0x17e   : > { %v599_v47 = vpop.xlane.xlu0 %598 }
 0x17f   : > { %v600_v49 = vrot.slane %v599_v47, 4 }
 0x181   : > { %v601_v51 = vadd.f32 %v600_v49, %v599_v47 }
 0x182   : > { %v614_v48 = vpop.xlane.xlu0 %613 }
 0x183   : > { %v615_v50 = vrot.slane %v614_v48, 4  ;;  %v602_v53 = vrot.slane %v601_v51, 2 }
 0x185   : > { %v917_v13 = vpop.eup %916  ;;  %v616_v52 = vadd.f32 %v615_v50, %v614_v48  ;;  %v603_v59 = vadd.f32 %v602_v53, %v601_v51 }
 0x186   : > { %v552_v14 = vmul.f32 0.6931472, %v917_v13 }
 0x187   : > { %v617_v55 = vrot.slane %v616_v52, 2  ;;  %v604_v1 = vrot.slane %v603_v59, 1 }
 0x188   : > { %v553_v15 = vsub.f32 %v545_v5, %v552_v14 }
 0x189   : > { %v618_v62 = vadd.f32 %v617_v55, %v616_v52  ;;  %v605_v7 = vadd.f32 %v604_v1, %v603_v59 }
 0x18a   : > { %v561_v16 = vsel %vm560_vm1, %v553_v15, 0.0 }
 0x18b   : > { %v562_v17 = vsel %vm541_vm0, %v561_v16, 0.0  ;;  %v619_v4 = vrot.slane %v618_v62, 1 }
 0x18c   : > { %563 = vadd.xlane.f32.xlu1 %v562_v17  ;;  %v589_v17 = vld [vmem:[#allocation3] sm:$0x1] }
 0x18d   : > { %v620_v8 = vadd.f32 %v619_v4, %v618_v62 }
 0x219   : > { %v564_v37 = vpop.xlane.xlu1 %563 }
 0x21a   : > { %v565_v38 = vmul.f32 1.442695, %v564_v37 }
 0x21c   : > { %918 = vpow2.f32 %v565_v38 }
 0x226   : > { %v919_v39 = vpop.eup %918 }
 0x227   : > { %v567_v40 = vsub.f32 1.0, %v919_v39 }
 0x229   : > { %v568_v41 = vmul.f32 %v567_v40, %v567_v40 }
 0x22b   : > { %v569_v42 = vsub.f32 0.0, %v568_v41 }
 0x22d   : > { %v570_v43 = vmul.f32 %v569_v42, %v564_v37 }
 0x22f   : > { %v571_v44 = vsel %vm539_vm2, %v570_v43, 0.0 }
 0x230   : > { %v574_v45 = vsel %vm573_vm4, %v571_v44, 0.0 }
 0x231   : > { %575 = vadd.xlane.f32.xlu0 %v574_v45 }
 0x235   : > { %629 = vadd.xlane.f32.xlu0 %v628_v36 }
 0x2be   : > { %v576_v54 = vpop.xlane.xlu0 %575 }
 0x2bf   : > { %v577_v56 = vrot.slane %v576_v54, 4 }
 0x2c1   : > { %v578_v57 = vadd.f32 %v577_v56, %v576_v54 }
 0x2c2   : > { %v630_v58 = vpop.xlane.xlu0 %629 }
 0x2c3   : > { %v579_v60 = vrot.slane %v578_v57, 2  ;;  %v631_v61 = vrot.slane %v630_v58, 4 }
 0x2c5   : > { %v632_v63 = vadd.f32 %v631_v61, %v630_v58  ;;  %v580_v0 = vadd.f32 %v579_v60, %v578_v57 }
 0x2c7   : > { %v633_v2 = vrot.slane %v632_v63, 2  ;;  %v581_v3 = vrot.slane %v580_v0, 1 }
 0x2c9   : > { %v634_v5 = vadd.f32 %v633_v2, %v632_v63  ;;  %v582_v6 = vadd.f32 %v581_v3, %v580_v0 }
 0x2cb   : > { %842 = vpush %v582_v6  ;;  %v635_v9 = vrot.slane %v634_v5, 1 }
 0x2cc   : > { %844 = vpush %v605_v7 }
 0x2cd   : > { %846 = vpush %v620_v8  ;;  %v636_v10 = vadd.f32 %v635_v9, %v634_v5 }
 0x2cf   : > { %848 = vpush %v636_v10 }
 0x2fc   : > { %s843_s9 = spop %842 }
 0x2fd   : > { %v584_v12 = vstv %s843_s9  ;;  %s845_s11 = spop %844 }
 0x2fe   : > { %v585_v13 = vadd.f32 %v584_v12, %v572_v11  ;;  %v607_v14 = vstv %s845_s11  ;;  %s847_s12 = spop %846 }
 0x2ff   : > { %v622_v15 = vstv %s847_s12 }
 0x300   : > { %587 = vst.msk [vmem:[#allocation2] sm:$0x1] %vm530_vm5, %v585_v13  ;;  %v623_v16 = vadd.f32 %v622_v15, %v607_v14  ;;  %s849_s23 = spop %848 }
 0x301   : > { %v638_v18 = vstv %s849_s23 }
 0x302   : > { %v639_v19 = vadd.f32 %v638_v18, %v623_v16 }
 0x304   : > { %v640_v20 = vadd.f32 %v639_v19, %v589_v17 }
 0x306   : > { %641 = vst.msk [vmem:[#allocation3] sm:$0x1] %vm530_vm5, %v640_v20 }
 0x307   : > { %v645_v21 = vld [vmem:[#allocation2] sm:$0x1] }
 0x308   : > { %646 = vst.msk [vmem:[%s522_s14] sm:$0x1] %vm530_vm5, %v645_v21 }
 0x30d   : > { %v647_v22 = vld [vmem:[#allocation3] sm:$0x1] }
 0x30e   : > { %648 = vst.msk [vmem:[%s525_s10] sm:$0x1] %vm530_vm5, %v647_v22 }
 0x30f PF: > { %s24_s28 = sadd.s32 1, %s1031_s28   ;;  %s1257_s24 = smov %s1019_s25 }
 0x310   : > { %p21_p3 = scmp.ge.s32.totalorder %s24_s28, 4   ;;  %s1231_s25 = smov 0  }
 0x311   : > { %s1258_s26 = smov %s1027_s27  ;;  %s1259_s27 = smov %s1261_s30 }
 0x312   :  { %23 = sbr.rel (!%p21_p3) target bundleno = 6 (0x6), region = 129 }
 0x319   :  { %678 = vsyncpa [#allocation5], 1 }
 0x31a   :  { %680 = vsyncpa [#allocation5 + $0x1], 1 }
 0x31b   :  { %681 = vsyncpa [#allocation7], 1 }
 0x31c   :  { %683 = vsyncpa [#allocation7 + $0x1], 1 }

</bundles_post_ra>
